<compile_context>
chip_gen: v6e
topology: v6e:2x2x1
jax: 0.10.0
libtpu: 0.0.40
codegen_flags: <defaults>
</compile_context>

<pallas_src>
import functools

import jax
import jax.numpy as jnp
import numpy as np
from jax.experimental import pallas as pl
from jax.experimental.pallas import tpu as pltpu


def _spatial_softmax_kernel(x_ref, w_ref, pos_ref, ex_ref, ey_ref,
                            *, temperature: float):
    # x_ref:   (Bb, C, HW)  feature-map block
    # w_ref:   (K, C)       1x1 conv weight
    # pos_ref: (2, HW)      row 0 = pos_x, row 1 = pos_y, in [-1, 1]
    # ex_ref:  (Bb, 1, K)   expected x per keypoint
    # ey_ref:  (Bb, 1, K)   expected y per keypoint
    x = x_ref[...]                                   # [Bb, C, HW]
    # Temperature folded into the tiny [K, C] weight tile.  Bias intentionally
    # absent: a per-keypoint constant along HW cancels in the softmax.
    w = w_ref[...] * (1.0 / temperature)             # [K, C]

    c_dim = x.shape[1]

    if c_dim <= 8:
        # Depth-C contraction is far too small to fill the MXU (v5e 4x128^2 /
        # v6e-v7x 2x256^2); do C broadcast FMAs on otherwise-idle VALU slots.
        f = w[None, :, 0:1] * x[:, 0:1, :]           # [Bb, K, HW]
        for c in range(1, c_dim):
            f = f + w[None, :, c:c + 1] * x[:, c:c + 1, :]
    else:
        # Larger channel counts: let the MXU do the contraction.
        f = jnp.einsum('kc,bcs->bks', w, x,
                       preferred_element_type=jnp.float32)

    # Numerically-stable spatial softmax over HW with deferred normalization.
    m = jnp.max(f, axis=-1, keepdims=True)           # [Bb, K, 1]
    e = jnp.exp(f - m)                               # [Bb, K, HW]

    pos = pos_ref[...]                               # [2, HW]
    posx = pos[0:1, :][None]                         # [1, 1, HW]
    posy = pos[1:2, :][None]                         # [1, 1, HW]

    s = jnp.sum(e, axis=-1)                          # [Bb, K]
    sx = jnp.sum(e * posx, axis=-1)                  # [Bb, K]
    sy = jnp.sum(e * posy, axis=-1)                  # [Bb, K]

    inv = pl.reciprocal(s, approx=False)             # [Bb, K]  (exact: keeps 1e-5 tol)
    ex_ref[...] = (sx * inv)[:, None, :]             # [Bb, 1, K]
    ey_ref[...] = (sy * inv)[:, None, :]             # [Bb, 1, K]


def spatial_softmax(feature, conv_w, conv_b, pos_x, pos_y, temperature=1.0):
    """feature: [B, C, H, W] float32 -> keypoints [B, K, 2] float32.

    conv_b is accepted for API parity with the PyTorch module but unused: a
    per-keypoint bias is constant along the softmax (HW) axis and cancels.
    """
    del conv_b
    B, C, H, W = feature.shape
    K = conv_w.shape[0]
    HW = H * W

    x = feature.reshape(B, C, HW)                    # glue reshape (no data move)
    pos = jnp.concatenate([pos_x.reshape(1, HW),
                           pos_y.reshape(1, HW)], axis=0)   # [2, HW]

    # Batch blocking: at most 2 grid steps (feeds both v7x TCs) with B/2 images
    # per step (amortizes per-step pipeline overhead for larger B).
    bb = 1 if B <= 1 else pl.cdiv(B, 2)
    nb = pl.cdiv(B, bb)

    kernel = functools.partial(_spatial_softmax_kernel,
                               temperature=float(temperature))

    ex, ey = pl.pallas_call(
        kernel,
        out_shape=(jax.ShapeDtypeStruct((B, 1, K), jnp.float32),
                   jax.ShapeDtypeStruct((B, 1, K), jnp.float32)),
        grid_spec=pltpu.PrefetchScalarGridSpec(
            num_scalar_prefetch=0,
            grid=(nb,),
            in_specs=[
                pl.BlockSpec((bb, C, HW), lambda i: (i, 0, 0)),
                pl.BlockSpec((K, C), lambda i: (0, 0)),
                pl.BlockSpec((2, HW), lambda i: (0, 0)),
            ],
            out_specs=[
                pl.BlockSpec((bb, 1, K), lambda i: (i, 0, 0)),
                pl.BlockSpec((bb, 1, K), lambda i: (i, 0, 0)),
            ],
        ),
        compiler_params=pltpu.CompilerParams(
            dimension_semantics=("parallel",)),
    )(x, conv_w, pos)

    # Lane-dense kernel outputs -> [B, K, 2] assembled in the wrapper.
    out = jnp.concatenate([ex, ey], axis=1)          # [B, 2, K]
    return jnp.swapaxes(out, 1, 2)                   # [B, K, 2]


def spatial_softmax_ref(feature, conv_w, conv_b, pos_x, pos_y, temperature=1.0):
    """Pure-JAX reference mirroring the PyTorch forward (eval, no variance)."""
    B, C, H, W = feature.shape
    K = conv_w.shape[0]
    HW = H * W
    x = feature.reshape(B, C, HW)
    f = jnp.einsum('kc,bcs->bks', conv_w, x) + conv_b[None, :, None]
    f = f.reshape(B * K, HW) / temperature
    attn = jax.nn.softmax(f, axis=-1)
    ex = jnp.sum(pos_x.reshape(1, HW) * attn, axis=1, keepdims=True)
    ey = jnp.sum(pos_y.reshape(1, HW) * attn, axis=1, keepdims=True)
    return jnp.concatenate([ex, ey], axis=1).reshape(B, K, 2)


if __name__ == "__main__":
    # Module config: input_shape=[C, H, W]=[4, 16, 16], num_kp=32, temperature=1.0
    B, C, H, W = 2, 4, 16, 16
    K = 32
    temperature = 1.0

    key = jax.random.PRNGKey(0)
    k_feat, k_w, k_b = jax.random.split(key, 3)

    feature = jax.random.normal(k_feat, (B, C, H, W), dtype=jnp.float32)

    # Deterministic Conv2d(C, K, kernel_size=1) init (uniform in +/- 1/sqrt(C)).
    bound = 1.0 / np.sqrt(C)
    conv_w = jax.random.uniform(k_w, (K, C), minval=-bound, maxval=bound,
                                dtype=jnp.float32)
    conv_b = jax.random.uniform(k_b, (K,), minval=-bound, maxval=bound,
                                dtype=jnp.float32)

    # Position grids, same convention as the PyTorch buffers.
    pos_x_np, pos_y_np = np.meshgrid(np.linspace(-1.0, 1.0, W),
                                     np.linspace(-1.0, 1.0, H))
    pos_x = jnp.asarray(pos_x_np.reshape(1, H * W), dtype=jnp.float32)
    pos_y = jnp.asarray(pos_y_np.reshape(1, H * W), dtype=jnp.float32)

    out = spatial_softmax(feature, conv_w, conv_b, pos_x, pos_y, temperature)
    out = jax.block_until_ready(out)

    ref = spatial_softmax_ref(feature, conv_w, conv_b, pos_x, pos_y, temperature)
    np.testing.assert_allclose(np.asarray(out), np.asarray(ref),
                               rtol=1e-5, atol=1e-5)

    assert out.shape == (B, K, 2)
    # TODO(synk): output_variance=True covariance branch, training-time Gaussian
    # keypoint noise, and the num_kp=None (no conv) path are not exercised
    # (module defaults / eval mode).
    print("KERNEL_OK")
</pallas_src>

<mosaic_0001>
module attributes {stable_mosaic.version = 11 : i64} {
  func.func @_spatial_softmax_kernel(%arg0: i32, %arg1: memref<1x4x256xf32, #tpu.memory_space<vmem>>, %arg2: memref<32x4xf32, #tpu.memory_space<vmem>>, %arg3: memref<2x256xf32, #tpu.memory_space<vmem>>, %arg4: memref<1x1x32xf32, #tpu.memory_space<vmem>>, %arg5: memref<1x1x32xf32, #tpu.memory_space<vmem>>) attributes {dimension_semantics = [#tpu.dimension_semantics<parallel>], iteration_bounds = array<i64: 2>, scalar_prefetch = 0 : i64, scratch_operands = 0 : i64, tpu.core_type = #tpu.core_type<tc>, window_params = [{transform_indices = @transform_0, window_bounds = array<i64: 1, 4, 256>}, {pipeline_mode = #tpu.pipeline_mode<synchronous>, transform_indices = @transform_1, window_bounds = array<i64: 32, 4>}, {pipeline_mode = #tpu.pipeline_mode<synchronous>, transform_indices = @transform_2, window_bounds = array<i64: 2, 256>}, {transform_indices = @transform_3, window_bounds = array<i64: 1, 1, 32>}, {transform_indices = @transform_4, window_bounds = array<i64: 1, 1, 32>}]} {
    %c0 = arith.constant 0 : index
    %c0_0 = arith.constant 0 : index
    %c0_1 = arith.constant 0 : index
    %0 = vector.load %arg1[%c0, %c0_0, %c0_1] : memref<1x4x256xf32, #tpu.memory_space<vmem>>, vector<1x4x256xf32>
    %c0_2 = arith.constant 0 : index
    %c0_3 = arith.constant 0 : index
    %1 = vector.load %arg2[%c0_2, %c0_3] : memref<32x4xf32, #tpu.memory_space<vmem>>, vector<32x4xf32>
    %cst = arith.constant 1.000000e+00 : f32
    %2 = vector.broadcast %cst : f32 to vector<32x4xf32>
    %3 = arith.mulf %1, %2 : vector<32x4xf32>
    %4 = vector.extract_strided_slice %3 {offsets = [0, 0], sizes = [32, 1], strides = [1, 1]} : vector<32x4xf32> to vector<32x1xf32>
    %5 = vector.shape_cast %4 : vector<32x1xf32> to vector<1x32x1xf32>
    %6 = vector.extract_strided_slice %0 {offsets = [0, 0, 0], sizes = [1, 1, 256], strides = [1, 1, 1]} : vector<1x4x256xf32> to vector<1x1x256xf32>
    %7 = vector.broadcast %5 : vector<1x32x1xf32> to vector<1x32x256xf32>
    %8 = vector.broadcast %6 : vector<1x1x256xf32> to vector<1x32x256xf32>
    %9 = arith.mulf %7, %8 : vector<1x32x256xf32>
    %10 = vector.extract_strided_slice %3 {offsets = [0, 1], sizes = [32, 1], strides = [1, 1]} : vector<32x4xf32> to vector<32x1xf32>
    %11 = vector.shape_cast %10 : vector<32x1xf32> to vector<1x32x1xf32>
    %12 = vector.extract_strided_slice %0 {offsets = [0, 1, 0], sizes = [1, 1, 256], strides = [1, 1, 1]} : vector<1x4x256xf32> to vector<1x1x256xf32>
    %13 = vector.broadcast %11 : vector<1x32x1xf32> to vector<1x32x256xf32>
    %14 = vector.broadcast %12 : vector<1x1x256xf32> to vector<1x32x256xf32>
    %15 = arith.mulf %13, %14 : vector<1x32x256xf32>
    %16 = arith.addf %9, %15 : vector<1x32x256xf32>
    %17 = vector.extract_strided_slice %3 {offsets = [0, 2], sizes = [32, 1], strides = [1, 1]} : vector<32x4xf32> to vector<32x1xf32>
    %18 = vector.shape_cast %17 : vector<32x1xf32> to vector<1x32x1xf32>
    %19 = vector.extract_strided_slice %0 {offsets = [0, 2, 0], sizes = [1, 1, 256], strides = [1, 1, 1]} : vector<1x4x256xf32> to vector<1x1x256xf32>
    %20 = vector.broadcast %18 : vector<1x32x1xf32> to vector<1x32x256xf32>
    %21 = vector.broadcast %19 : vector<1x1x256xf32> to vector<1x32x256xf32>
    %22 = arith.mulf %20, %21 : vector<1x32x256xf32>
    %23 = arith.addf %16, %22 : vector<1x32x256xf32>
    %24 = vector.extract_strided_slice %3 {offsets = [0, 3], sizes = [32, 1], strides = [1, 1]} : vector<32x4xf32> to vector<32x1xf32>
    %25 = vector.shape_cast %24 : vector<32x1xf32> to vector<1x32x1xf32>
    %26 = vector.extract_strided_slice %0 {offsets = [0, 3, 0], sizes = [1, 1, 256], strides = [1, 1, 1]} : vector<1x4x256xf32> to vector<1x1x256xf32>
    %27 = vector.broadcast %25 : vector<1x32x1xf32> to vector<1x32x256xf32>
    %28 = vector.broadcast %26 : vector<1x1x256xf32> to vector<1x32x256xf32>
    %29 = arith.mulf %27, %28 : vector<1x32x256xf32>
    %30 = arith.addf %23, %29 : vector<1x32x256xf32>
    %cst_4 = arith.constant dense<0xFF800000> : vector<1x32xf32>
    %31 = vector.multi_reduction <maximumf>, %30, %cst_4 [2] : vector<1x32x256xf32> to vector<1x32xf32>
    %32 = vector.shape_cast %31 : vector<1x32xf32> to vector<1x32x1xf32>
    %33 = vector.broadcast %32 : vector<1x32x1xf32> to vector<1x32x256xf32>
    %34 = arith.subf %30, %33 : vector<1x32x256xf32>
    %35 = math.exp %34 : vector<1x32x256xf32>
    %c0_5 = arith.constant 0 : index
    %c0_6 = arith.constant 0 : index
    %36 = vector.load %arg3[%c0_5, %c0_6] : memref<2x256xf32, #tpu.memory_space<vmem>>, vector<2x256xf32>
    %37 = vector.extract_strided_slice %36 {offsets = [0, 0], sizes = [1, 256], strides = [1, 1]} : vector<2x256xf32> to vector<1x256xf32>
    %38 = vector.shape_cast %37 : vector<1x256xf32> to vector<1x1x256xf32>
    %39 = vector.extract_strided_slice %36 {offsets = [1, 0], sizes = [1, 256], strides = [1, 1]} : vector<2x256xf32> to vector<1x256xf32>
    %40 = vector.shape_cast %39 : vector<1x256xf32> to vector<1x1x256xf32>
    %cst_7 = arith.constant dense<0.000000e+00> : vector<1x32xf32>
    %41 = vector.multi_reduction <add>, %35, %cst_7 [2] : vector<1x32x256xf32> to vector<1x32xf32>
    %42 = vector.broadcast %38 : vector<1x1x256xf32> to vector<1x32x256xf32>
    %43 = arith.mulf %35, %42 : vector<1x32x256xf32>
    %cst_8 = arith.constant dense<0.000000e+00> : vector<1x32xf32>
    %44 = vector.multi_reduction <add>, %43, %cst_8 [2] : vector<1x32x256xf32> to vector<1x32xf32>
    %45 = vector.broadcast %40 : vector<1x1x256xf32> to vector<1x32x256xf32>
    %46 = arith.mulf %35, %45 : vector<1x32x256xf32>
    %cst_9 = arith.constant dense<0.000000e+00> : vector<1x32xf32>
    %47 = vector.multi_reduction <add>, %46, %cst_9 [2] : vector<1x32x256xf32> to vector<1x32xf32>
    %48 = tpu.reciprocal %41 : vector<1x32xf32> -> vector<1x32xf32>
    %49 = arith.mulf %44, %48 : vector<1x32xf32>
    %50 = vector.shape_cast %49 : vector<1x32xf32> to vector<1x1x32xf32>
    %c0_10 = arith.constant 0 : index
    %c0_11 = arith.constant 0 : index
    %c0_12 = arith.constant 0 : index
    %51 = vector.load %arg4[%c0_10, %c0_11, %c0_12] : memref<1x1x32xf32, #tpu.memory_space<vmem>>, vector<1x1x32xf32>
    tpu.vector_store %arg4[%c0_10, %c0_11, %c0_12], %50 {strides = array<i32>} : memref<1x1x32xf32, #tpu.memory_space<vmem>>, vector<1x1x32xf32>,
    %52 = arith.mulf %47, %48 : vector<1x32xf32>
    %53 = vector.shape_cast %52 : vector<1x32xf32> to vector<1x1x32xf32>
    %c0_13 = arith.constant 0 : index
    %c0_14 = arith.constant 0 : index
    %c0_15 = arith.constant 0 : index
    %54 = vector.load %arg5[%c0_13, %c0_14, %c0_15] : memref<1x1x32xf32, #tpu.memory_space<vmem>>, vector<1x1x32xf32>
    tpu.vector_store %arg5[%c0_13, %c0_14, %c0_15], %53 {strides = array<i32>} : memref<1x1x32xf32, #tpu.memory_space<vmem>>, vector<1x1x32xf32>,
    return
  }
  func.func @transform_0(%arg0: i32) -> (i32, i32, i32) {
    %c0_i32 = arith.constant 0 : i32
    %c0_i32_0 = arith.constant 0 : i32
    %c0_i32_1 = arith.constant 0 : i32
    return %arg0, %c0_i32, %c0_i32_0 : i32, i32, i32
  }
  func.func @transform_1(%arg0: i32) -> (i32, i32) {
    %c0_i32 = arith.constant 0 : i32
    %c0_i32_0 = arith.constant 0 : i32
    %c0_i32_1 = arith.constant 0 : i32
    return %c0_i32, %c0_i32_0 : i32, i32
  }
  func.func @transform_2(%arg0: i32) -> (i32, i32) {
    %c0_i32 = arith.constant 0 : i32
    %c0_i32_0 = arith.constant 0 : i32
    %c0_i32_1 = arith.constant 0 : i32
    return %c0_i32, %c0_i32_0 : i32, i32
  }
  func.func @transform_3(%arg0: i32) -> (i32, i32, i32) {
    %c0_i32 = arith.constant 0 : i32
    %c0_i32_0 = arith.constant 0 : i32
    %c0_i32_1 = arith.constant 0 : i32
    return %arg0, %c0_i32, %c0_i32_0 : i32, i32, i32
  }
  func.func @transform_4(%arg0: i32) -> (i32, i32, i32) {
    %c0_i32 = arith.constant 0 : i32
    %c0_i32_0 = arith.constant 0 : i32
    %c0_i32_1 = arith.constant 0 : i32
    return %arg0, %c0_i32, %c0_i32_0 : i32, i32, i32
  }
}

</mosaic_0001>

<bundles_post_ra>
// kernel: tpu_custom_call.1
= control target key start
LH: loop header
LB: loop body
LE: loop exit
PB: predicated region body
PF: predicated region fallthrough
CT: control target
= control target key end

     0   :  { %10 = vsyncpa [#allocation3], 0  ;;  %s1136_s0 = inlined_call_operand.vmem [shape: f32[2,4,256], index: 0, kind: input, shape index: {}]   ;;  %s1137_s1 = inlined_call_operand.vmem [shape: f32[32,4], index: 1, kind: input, shape index: {}]   ;;  %s1138_s2 = inlined_call_operand.vmem [shape: f32[2,256], index: 2, kind: input, shape index: {}]   ;;  %s1139_s3 = inlined_call_operand.hbm [shape: f32[2,1,32], index: 3, kind: output, shape index: {0}]   ;;  %s1140_s4 = inlined_call_operand.hbm [shape: f32[2,1,32], index: 4, kind: output, shape index: {1}]  }
   0x1   :  { %12 = vsyncpa [#allocation3 + $0x1], 0 }
   0x2   :  { %13 = vsyncpa [#allocation5], 0 }
   0x3   :  { %15 = vsyncpa [#allocation5 + $0x1], 0  ;;  %s929_s15 = smov 0   ;;  %s931_s16 = smov 0  }
   0x4   :  { %s933_s17 = smov 0   ;;  %s935_s18 = smov 0  }
   0x5 LB: > { %s950_s19 = sadd.s32 4294967295, %s896_s18   ;;  %s717_s20 = sadd.s32 4294967294, %s896_s18   ;;  %s896_s18 = sphi %s935_s18, %s1146_s18   ;;  %s892_s17 = sphi %s933_s17, %s1145_s17   ;;  %s888_s16 = sphi %s931_s16, %s1144_s16   ;;  %s884_s15 = sphi %s929_s15, %s1143_s15  }
   0x6   : > { %s954_s21 = sadd.s32 1, %s896_s18   ;;  %s96_s22 = sadd.s32 1, %s892_s17 }
   0x7   : > { %s93_s23 = ssub.s32 %s896_s18, %s954_s21  ;;  %p106_p0 = scmp.ne.s32.totalorder %s892_s17, %s888_s16 }
   0x8   : > { %p94_p1 = scmp.eq.s32.totalorder %s93_s23, 0  ;;  %p107_p2 = scmp.eq.s32.totalorder %s950_s19, 1 }
   0x9   : > { %p112_p3 = scmp.ne.s32.totalorder %s888_s16, %s884_s15  ;;  %p113_p4 = scmp.eq.s32.totalorder %s717_s20, 1 }
   0xa   : > { %s965_s24 = scalar_select %p94_p1, %s892_s17, %s96_s22  }
   0xb   : > { %p967_p5 = por %p107_p2, %p106_p0  ;;  %p971_p6 = por %p113_p4, %p112_p3 }
   0xc   : > { %p720_p7 = scmp.ge.s32.totalorder %s896_s18, 1  ;;  %p171_p8 = scmp.lt.s32.totalorder %s896_s18, 3 }
   0xe   : > { %p172_p9 = pnand %p720_p7, %p171_p8 }
   0xf   : > { %p200_p10 = scmp.lt.s32.totalorder (!%p172_p9), %s950_s19, 1  ;;  %s1040_s22 = sand.u32 (!%p172_p9), 1, %s888_s16  }
  0x10   : > { %175 = sbr.rel (%p172_p9) target bundleno = 538 (0x21a), region = 32  ;;  %s723_s23 = sshll.u32 (!%p172_p9), %s950_s19, 4 }
  0x11   : > { %s193_s27 = scalar_lea.vmem (!%p172_p9), [#allocation2], %s1040_s22  ;;  %s199_s29 = scalar_lea.vmem (!%p172_p9), [#allocation4], %s1040_s22 }
  0x12   : > { %s621_s28 = sshll.u32 (!%p172_p9), %s193_s27, 4  ;;  %s634_s30 = sshll.u32 (!%p172_p9), %s199_s29, 4  ;;  %s1059_s28 = int_to_ptr.vmem [resolvable:$true] %s621_s28  ;;  %s1071_s30 = int_to_ptr.vmem [resolvable:$true] %s634_s30 }
  0x13   : > { %s1057_s6 = scalar_lea.hbm (!%p172_p9), %s1139_s3, %s723_s23  ;;  %s806_s11 = scalar_lea.vmem (!%p172_p9), %s1059_s28, 16 }
  0x14   : > { %p807_p11 = scmp.ne.s32.totalorder (!%p172_p9), %s1059_s28, %s806_s11  ;;  %s902_s12 = smov (!%p172_p9), [#allocation2]  }
  0x15   : > { %v206_v0 = vld [vmem:[%s1137_s1] sm:$0xff]  ;;  %v898_v1 = vmov 1   ;;  %v899_v2 = vmov 0   ;;  %v207_v3 = vld [vmem:[%s1137_s1 + $0x8] sm:$0xff]  ;;  %v208_v4 = vld [vmem:[%s1137_s1 + $0x10] sm:$0xff]  ;;  %v900_v6 = vmov 2   ;;  %v231_v8 = vlaneseq }
  0x16   : > { %777 = vset.pattern.permute.xlu1 %v898_v1  ;;  %776 = vset.pattern.permute.xlu0 %v899_v2  ;;  %v209_v5 = vld [vmem:[%s1137_s1 + $0x18] sm:$0xff]  ;;  %v901_v7 = vmov 3   ;;  %s201_s9 = scalar_select %p200_p10, %s950_s19, 1  ;;  %vm556_vm0 = vcmask 130112   ;;  %vm563_vm1 = vcmask 195712   ;;  %vm570_vm2 = vcmask 261312  }
  0x17   : > { %258 = vperm.xlu1 %777, %v206_v0   ;;  %212 = vperm.xlu0 %776, %v206_v0   ;;  %v992_v11 = vshrl.u32 %v231_v8, 7  ;;  %vm573_vm3 = vcmask 253952   ;;  %p808_p12 = pnand %p807_p11, %p967_p5 }
  0x18   : > { %s727_s10 = sshll.u32 %s201_s9, 3  ;;  %s1069_s9 = scalar_lea.hbm %s1140_s4, %s723_s23 }
  0x19   : > { %s204_s13 = scalar_lea.vmem %s1136_s0, %s727_s10  ;;  %v998_v14 = vsub.s32 1, %v992_v11  ;;  %v279_v15 = vsub.s32 5, %v992_v11  ;;  %v1002_v17 = vsub.s32 0, %v992_v11  ;;  %v237_v18 = vsub.s32 4, %v992_v11  ;;  %s605_s10 = scalar_lea.sflag [#allocation3], %s1040_s22 }
  0x1a   : > { %v205_v16 = vld [vmem:[%s204_s13] sm:$0xff]  ;;  %v1006_v21 = vsub.s32 2, %v992_v11  ;;  %v329_v22 = vsub.s32 6, %v992_v11  ;;  %v1015_v33 = vsub.s32 3, %v992_v11  ;;  %v379_v34 = vsub.s32 7, %v992_v11  ;;  %p809_p13 = pneg %p808_p12  ;;  %s810_s13 = sshll.u32 %s902_s12, 4  ;;  %s811_s13 = int_to_ptr.vmem [resolvable:$false] %s810_s13 }
  0x1b   : > { %262 = vperm.xlu1 %777, %v207_v3   ;;  %217 = vperm.xlu0 %776, %v207_v3   ;;  %v276_v23 = vrot.slane %v205_v16, %v998_v14  ;;  %v280_v24 = vrot.slane %v205_v16, %v279_v15  ;;  %v234_v25 = vrot.slane %v205_v16, %v1002_v17  ;;  %s812_s14 = scalar_lea.vmem %s811_s13, 32  ;;  %p813_p0 = scmp.lt.s32.totalorder %s1059_s28, %s811_s13 }
  0x1c   : > { %v238_v26 = vrot.slane %v205_v16, %v237_v18  ;;  %v326_v29 = vrot.slane %v205_v16, %v1006_v21  ;;  %v330_v30 = vrot.slane %v205_v16, %v329_v22  ;;  %v376_v43 = vrot.slane %v205_v16, %v1015_v33  ;;  %p814_p1 = scmp.lt.s32.totalorder %s812_s14, %s806_s11 }
  0x1d   : > { %v286_v31 = vrot.slane %v276_v23, %v998_v14  ;;  %v290_v32 = vrot.slane %v280_v24, %v998_v14  ;;  %v244_v35 = vrot.slane %v234_v25, %v1002_v17  ;;  %v380_v44 = vrot.slane %v205_v16, %v379_v34 }
  0x1e   : > { %v248_v36 = vrot.slane %v238_v26, %v1002_v17  ;;  %v336_v38 = vrot.slane %v326_v29, %v1006_v21  ;;  %v340_v39 = vrot.slane %v330_v30, %v1006_v21  ;;  %v386_v63 = vrot.slane %v376_v43, %v1015_v33  ;;  %p815_p2 = por %p814_p1, %p813_p0 }
  0x1f   : > { %266 = vperm.xlu1 %777, %v208_v4   ;;  %222 = vperm.xlu0 %776, %v208_v4  }
  0x20   : > { %p816_p3 = pnand %p815_p2, %p809_p13 }
  0x23   : > { %270 = vperm.xlu1 %777, %v209_v5   ;;  %227 = vperm.xlu0 %776, %v209_v5  }
  0x27   : > { %779 = vset.pattern.permute.xlu1 %v900_v6  ;;  %778 = vset.pattern.permute.xlu0 %v900_v6 }
  0x28   : > { %312 = vperm.xlu1 %779, %v207_v3   ;;  %308 = vperm.xlu0 %778, %v206_v0  }
  0x2c   : > { %316 = vperm.xlu1 %779, %v208_v4   ;;  %320 = vperm.xlu0 %778, %v209_v5  }
  0x30   : > { %780 = vset.pattern.permute.xlu1 %v901_v7  ;;  %781 = vset.pattern.permute.xlu0 %v901_v7 }
  0x31   : > { %358 = vperm.xlu1 %780, %v206_v0   ;;  %362 = vperm.xlu0 %781, %v207_v3   ;;  %v390_v0 = vrot.slane %v380_v44, %v1015_v33 }
  0x35   : > { %366 = vperm.xlu1 %780, %v208_v4  }
  0x39   : > { %370 = vperm.xlu1 %780, %v209_v5  }
  0x92   : > { %v259_v9 = vpop.permute.xlu1 %258  ;;  %v213_v10 = vpop.permute.xlu0 %212 }
  0x93   : > { %v291_v41 = vmul.f32 %v286_v31, %v259_v9  ;;  %v292_v42 = vmul.f32 %v290_v32, %v259_v9  ;;  %v249_v49 = vmul.f32 %v244_v35, %v213_v10  ;;  %v250_v50 = vmul.f32 %v248_v36, %v213_v10 }
  0x95   : > { %v299_v1 = vadd.f32 %v291_v41, %v249_v49  ;;  %v300_v2 = vadd.f32 %v292_v42, %v250_v50 }
  0x96   : > { %v263_v12 = vpop.permute.xlu1 %262  ;;  %v218_v13 = vpop.permute.xlu0 %217 }
  0x97   : > { %v293_v45 = vmul.f32 %v286_v31, %v263_v12  ;;  %v294_v46 = vmul.f32 %v290_v32, %v263_v12  ;;  %v251_v47 = vmul.f32 %v244_v35, %v218_v13  ;;  %v252_v48 = vmul.f32 %v248_v36, %v218_v13 }
  0x99   : > { %v301_v61 = vadd.f32 %v293_v45, %v251_v47  ;;  %v302_v62 = vadd.f32 %v294_v46, %v252_v48 }
  0x9a   : > { %v267_v19 = vpop.permute.xlu1 %266  ;;  %v223_v20 = vpop.permute.xlu0 %222 }
  0x9b   : > { %v295_v51 = vmul.f32 %v286_v31, %v267_v19  ;;  %v296_v52 = vmul.f32 %v290_v32, %v267_v19  ;;  %v253_v53 = vmul.f32 %v244_v35, %v223_v20  ;;  %v254_v54 = vmul.f32 %v248_v36, %v223_v20 }
  0x9d   : > { %v303_v3 = vadd.f32 %v295_v51, %v253_v53  ;;  %v304_v4 = vadd.f32 %v296_v52, %v254_v54 }
  0x9e   : > { %v271_v27 = vpop.permute.xlu1 %270  ;;  %v228_v28 = vpop.permute.xlu0 %227 }
  0x9f   : > { %v297_v22 = vmul.f32 %v286_v31, %v271_v27  ;;  %v298_v23 = vmul.f32 %v290_v32, %v271_v27  ;;  %v255_v24 = vmul.f32 %v244_v35, %v228_v28  ;;  %v256_v25 = vmul.f32 %v248_v36, %v228_v28 }
  0xa1   : > { %v305_v48 = vadd.f32 %v297_v22, %v255_v24  ;;  %v306_v49 = vadd.f32 %v298_v23, %v256_v25 }
  0xa3   : > { %v313_v37 = vpop.permute.xlu1 %312  ;;  %v309_v40 = vpop.permute.xlu0 %308 }
  0xa4   : > { %v343_v55 = vmul.f32 %v336_v38, %v313_v37  ;;  %v344_v56 = vmul.f32 %v340_v39, %v313_v37  ;;  %v341_v59 = vmul.f32 %v336_v38, %v309_v40  ;;  %v342_v60 = vmul.f32 %v340_v39, %v309_v40 }
  0xa6   : > { %v351_v5 = vadd.f32 %v343_v55, %v301_v61  ;;  %v352_v6 = vadd.f32 %v344_v56, %v302_v62  ;;  %v349_v7 = vadd.f32 %v341_v59, %v299_v1  ;;  %v350_v9 = vadd.f32 %v342_v60, %v300_v2 }
  0xa7   : > { %v317_v57 = vpop.permute.xlu1 %316  ;;  %v321_v58 = vpop.permute.xlu0 %320 }
  0xa8   : > { %v345_v10 = vmul.f32 %v336_v38, %v317_v57  ;;  %v346_v12 = vmul.f32 %v340_v39, %v317_v57  ;;  %v347_v41 = vmul.f32 %v336_v38, %v321_v58  ;;  %v348_v42 = vmul.f32 %v340_v39, %v321_v58 }
  0xaa   : > { %v353_v37 = vadd.f32 %v345_v10, %v303_v3  ;;  %v354_v40 = vadd.f32 %v346_v12, %v304_v4  ;;  %v355_v28 = vadd.f32 %v347_v41, %v305_v48  ;;  %v356_v35 = vadd.f32 %v348_v42, %v306_v49  ;;  %v443_v10 = vld [vmem:[%s1138_s2] sm:$0xf] }
  0xab   : > { %v498_v22 = vrot.slane %v443_v10, %v998_v14 }
  0xac   : > { %v359_v13 = vpop.permute.xlu1 %358  ;;  %v363_v15 = vpop.permute.xlu0 %362 }
  0xad   : > { %v391_v16 = vmul.f32 %v386_v63, %v359_v13  ;;  %v392_v18 = vmul.f32 %v390_v0, %v359_v13  ;;  %v393_v19 = vmul.f32 %v386_v63, %v363_v15  ;;  %v394_v20 = vmul.f32 %v390_v0, %v363_v15 }
  0xae   : > { %v460_v13 = vrot.slane %v443_v10, %v1002_v17  ;;  %v464_v15 = vrot.slane %v443_v10, %v1006_v21  ;;  %v508_v41 = vrot.slane %v498_v22, %v998_v14 }
  0xaf   : > { %v401_v26 = vadd.f32 %v393_v19, %v351_v5  ;;  %v402_v29 = vadd.f32 %v394_v20, %v352_v6  ;;  %v399_v30 = vadd.f32 %v391_v16, %v349_v7  ;;  %v400_v34 = vadd.f32 %v392_v18, %v350_v9 }
  0xb0   : > { %v367_v43 = vpop.permute.xlu1 %366  ;;  %v470_v25 = vrot.slane %v460_v13, %v1002_v17 }
  0xb1   : > { %v395_v44 = vmul.f32 %v386_v63, %v367_v43  ;;  %v396_v45 = vmul.f32 %v390_v0, %v367_v43  ;;  %v410_v46 = vmax.f32 %v401_v26, %v402_v29  ;;  %v407_v47 = vmax.f32 %v399_v30, %v400_v34 }
  0xb3   : > { %411 = vmax.xlane.f32.xlu1 %v410_v46  ;;  %408 = vmax.xlane.f32.xlu0 %v407_v47  ;;  %v403_v27 = vadd.f32 %v395_v44, %v353_v37  ;;  %v404_v31 = vadd.f32 %v396_v45, %v354_v40 }
  0xb4   : > { %v371_v32 = vpop.permute.xlu1 %370 }
  0xb5   : > { %v397_v36 = vmul.f32 %v386_v63, %v371_v32  ;;  %v398_v50 = vmul.f32 %v390_v0, %v371_v32  ;;  %v413_v51 = vmax.f32 %v403_v27, %v404_v31 }
  0xb7   : > { %414 = vmax.xlane.f32.xlu0 %v413_v51  ;;  %v405_v38 = vadd.f32 %v397_v36, %v355_v28  ;;  %v406_v39 = vadd.f32 %v398_v50, %v356_v35 }
  0xb9   : > { %v416_v52 = vmax.f32 %v405_v38, %v406_v39 }
  0xbb   : > { %417 = vmax.xlane.f32.xlu0 %v416_v52 }
 0x13c   : > { %v412_v53 = vpop.xlane.xlu1 %411  ;;  %v409_v54 = vpop.xlane.xlu0 %408 }
 0x13d   : > { %v421_v55 = vsub.f32 %v401_v26, %v412_v53  ;;  %v422_v56 = vsub.f32 %v402_v29, %v412_v53  ;;  %v419_v57 = vsub.f32 %v399_v30, %v409_v54  ;;  %v420_v58 = vsub.f32 %v400_v34, %v409_v54 }
 0x13e   : > { %v474_v26 = vrot.slane %v464_v15, %v1002_v17  ;;  %v502_v29 = vrot.slane %v443_v10, %v1015_v33 }
 0x13f   : > { %v431_v59 = vmul.f32 1.442695, %v421_v55  ;;  %v433_v60 = vmul.f32 1.442695, %v422_v56  ;;  %v427_v61 = vmul.f32 1.442695, %v419_v57 }
 0x140   : > { %v429_v62 = vmul.f32 1.442695, %v420_v58  ;;  %v415_v1 = vpop.xlane.xlu0 %414  ;;  %v512_v42 = vrot.slane %v502_v29, %v998_v14 }
 0x141   : > { %782 = vpow2.f32 %v431_v59  ;;  %v423_v63 = vsub.f32 %v403_v27, %v415_v1  ;;  %v424_v0 = vsub.f32 %v404_v31, %v415_v1 }
 0x142   : > { %784 = vpow2.f32 %v433_v60  ;;  %v546_v60 = vand.u32 127, %v231_v8 }
 0x143   : > { %786 = vpow2.f32 %v427_v61  ;;  %v435_v2 = vmul.f32 1.442695, %v423_v63  ;;  %v437_v3 = vmul.f32 1.442695, %v424_v0 }
 0x144   : > { %788 = vpow2.f32 %v429_v62  ;;  %v418_v4 = vpop.xlane.xlu0 %417  ;;  %v551_v1 = vadd.s32 4294967288, %v546_v60 }
 0x145   : > { %790 = vpow2.f32 %v435_v2  ;;  %v425_v5 = vsub.f32 %v405_v38, %v418_v4  ;;  %v426_v6 = vsub.f32 %v406_v39, %v418_v4  ;;  %v558_v2 = vadd.s32 4294967280, %v546_v60 }
 0x146   : > { %792 = vpow2.f32 %v437_v3 }
 0x147   : > { %v439_v7 = vmul.f32 1.442695, %v425_v5  ;;  %v441_v9 = vmul.f32 1.442695, %v426_v6  ;;  %v565_v5 = vadd.s32 4294967272, %v546_v60  ;;  %v549_v6 = vsub.s32 %v546_v60, %v992_v11 }
 0x148   : > { %v561_v8 = vsub.s32 %v558_v2, %v992_v11 }
 0x149   : > { %794 = vpow2.f32 %v439_v7 }
 0x14a   : > { %796 = vpow2.f32 %v441_v9  ;;  %v554_v9 = vsub.s32 %v551_v1, %v992_v11 }
 0x14e   : > { %v783_v12 = vpop.eup %782 }
 0x14f   : > { %v785_v16 = vpop.eup %784  ;;  %v477_v45 = vmul.f32 %v783_v12, %v470_v25  ;;  %v515_v49 = vmul.f32 %v783_v12, %v508_v41 }
 0x150   : > { %v787_v18 = vpop.eup %786  ;;  %v447_v19 = vadd.f32 %v785_v16, %v783_v12  ;;  %v478_v46 = vmul.f32 %v785_v16, %v474_v26  ;;  %v516_v27 = vmul.f32 %v785_v16, %v512_v42 }
 0x151   : > { %v789_v20 = vpop.eup %788  ;;  %v475_v21 = vmul.f32 %v787_v18, %v470_v25  ;;  %v513_v17 = vmul.f32 %v787_v18, %v508_v41 }
 0x152   : > { %v791_v23 = vpop.eup %790  ;;  %448 = vadd.xlane.f32.xlu0 %v447_v19  ;;  %v444_v24 = vadd.f32 %v789_v20, %v787_v18  ;;  %v476_v40 = vmul.f32 %v789_v20, %v474_v26  ;;  %v514_v48 = vmul.f32 %v789_v20, %v512_v42  ;;  %v486_v33 = vadd.f32 %v478_v46, %v477_v45 }
 0x153   : > { %v793_v30 = vpop.eup %792  ;;  %v479_v28 = vmul.f32 %v791_v23, %v470_v25  ;;  %v524_v35 = vadd.f32 %v516_v27, %v515_v49  ;;  %v517_v14 = vmul.f32 %v791_v23, %v508_v41  ;;  %v1044_v18 = vsub.s32 %v565_v5, %v992_v11 }
 0x154   : > { %445 = vadd.xlane.f32.xlu1 %v444_v24  ;;  %v450_v34 = vadd.f32 %v793_v30, %v791_v23  ;;  %v483_v47 = vadd.f32 %v476_v40, %v475_v21  ;;  %v521_v31 = vadd.f32 %v514_v48, %v513_v17  ;;  %v480_v32 = vmul.f32 %v793_v30, %v474_v26 }
 0x155   : > { %v518_v36 = vmul.f32 %v793_v30, %v512_v42 }
 0x156   : > { %v795_v37 = vpop.eup %794  ;;  %v489_v50 = vadd.f32 %v480_v32, %v479_v28 }
 0x157   : > { %v797_v43 = vpop.eup %796  ;;  %v481_v51 = vmul.f32 %v795_v37, %v470_v25  ;;  %v527_v39 = vadd.f32 %v518_v36, %v517_v14  ;;  %v519_v52 = vmul.f32 %v795_v37, %v508_v41 }
 0x158   : > { %451 = vadd.xlane.f32.xlu1 %v450_v34  ;;  %v453_v44 = vadd.f32 %v797_v43, %v795_v37  ;;  %v482_v38 = vmul.f32 %v797_v43, %v474_v26  ;;  %v520_v53 = vmul.f32 %v797_v43, %v512_v42 }
 0x15a   : > { %454 = vadd.xlane.f32.xlu0 %v453_v44  ;;  %v492_v54 = vadd.f32 %v482_v38, %v481_v51  ;;  %v530_v55 = vadd.f32 %v520_v53, %v519_v52 }
 0x15c   : > { %484 = vadd.xlane.f32.xlu1 %v483_v47 }
 0x15e   : > { %487 = vadd.xlane.f32.xlu0 %v486_v33 }
 0x160   : > { %522 = vadd.xlane.f32.xlu1 %v521_v31 }
 0x162   : > { %525 = vadd.xlane.f32.xlu0 %v524_v35 }
 0x164   : > { %490 = vadd.xlane.f32.xlu1 %v489_v50 }
 0x166   : > { %528 = vadd.xlane.f32.xlu0 %v527_v39 }
 0x168   : > { %493 = vadd.xlane.f32.xlu1 %v492_v54 }
 0x16a   : > { %531 = vadd.xlane.f32.xlu0 %v530_v55 }
 0x1db   : > { %v449_v56 = vpop.xlane.xlu0 %448 }
 0x1dc   : > { %798 = vrcp.f32 %v449_v56 }
 0x1dd   : > { %v446_v57 = vpop.xlane.xlu1 %445 }
 0x1de   : > { %800 = vrcp.f32 %v446_v57 }
 0x1e1   : > { %v452_v58 = vpop.xlane.xlu1 %451 }
 0x1e2   : > { %802 = vrcp.f32 %v452_v58 }
 0x1e3   : > { %v455_v59 = vpop.xlane.xlu0 %454 }
 0x1e4   : > { %804 = vrcp.f32 %v455_v59 }
 0x1e5   : > { %v485_v61 = vpop.xlane.xlu1 %484 }
 0x1e7   : > { %v488_v62 = vpop.xlane.xlu0 %487 }
 0x1e9   : > { %v799_v63 = vpop.eup %798  ;;  %v523_v0 = vpop.xlane.xlu1 %522 }
 0x1ea   : > { %v538_v10 = vmul.f32 %v799_v63, %v488_v62 }
 0x1eb   : > { %v801_v3 = vpop.eup %800  ;;  %v526_v4 = vpop.xlane.xlu0 %525 }
 0x1ec   : > { %v537_v7 = vmul.f32 %v801_v3, %v485_v61  ;;  %v576_v13 = vmul.f32 %v799_v63, %v526_v4  ;;  %v575_v16 = vmul.f32 %v801_v3, %v523_v0  ;;  %v555_v22 = vrot.slane %v538_v10, %v554_v9 }
 0x1ed   : > { %v491_v12 = vpop.xlane.xlu1 %490 }
 0x1ee   : > { %v550_v20 = vrot.slane %v537_v7, %v549_v6  ;;  %v590_v30 = vrot.slane %v576_v13, %v554_v9  ;;  %v586_v21 = vrot.slane %v575_v16, %v549_v6 }
 0x1ef   : > { %v803_v15 = vpop.eup %802  ;;  %v529_v19 = vpop.xlane.xlu0 %528 }
 0x1f0   : > { %v539_v23 = vmul.f32 %v803_v15, %v491_v12  ;;  %v577_v24 = vmul.f32 %v803_v15, %v529_v19  ;;  %v557_v40 = vsel %vm556_vm0, %v555_v22, %v550_v20  ;;  %v591_v44 = vsel %vm556_vm0, %v590_v30, %v586_v21 }
 0x1f1   : > { %v805_v25 = vpop.eup %804  ;;  %v494_v26 = vpop.xlane.xlu1 %493 }
 0x1f2   : > { %v562_v29 = vrot.slane %v539_v23, %v561_v8  ;;  %v540_v34 = vmul.f32 %v805_v25, %v494_v26  ;;  %v595_v37 = vrot.slane %v577_v24, %v561_v8 }
 0x1f3   : > { %v532_v11 = vpop.xlane.xlu0 %531 }
 0x1f4   : > { %v569_v41 = vrot.slane %v540_v34, %v1044_v18  ;;  %v578_v42 = vmul.f32 %v805_v25, %v532_v11  ;;  %v564_v43 = vsel %vm563_vm1, %v562_v29, %v557_v40  ;;  %v596_v47 = vsel %vm563_vm1, %v595_v37, %v591_v44 }
 0x1f6   : > { %v600_v45 = vrot.slane %v578_v42, %v1044_v18  ;;  %v571_v46 = vsel %vm570_vm2, %v569_v41, %v564_v43 }
 0x1f7   : > { %574 = vst.msk [vmem:[%s193_s27] sm:$0x1] %vm573_vm3, %v571_v46 }
 0x1f8   : > { %819 = shalt.err (!%p816_p3)
}
 0x1f9   : > { %s820_s20 = scalar_lea.hbm %s1057_s6, 16  ;;  %s824_s19 = scalar_lea.hbm %s1139_s3, 32 }
 0x1fa   : > { %p821_p4 = scmp.ne.s32.totalorder %s1057_s6, %s820_s20  ;;  %p825_p9 = scmp.lt.s32.totalorder %s1057_s6, %s1139_s3 }
 0x1fb   : > { %p826_p10 = scmp.lt.s32.totalorder %s824_s19, %s820_s20 }
 0x1fc   : > { %p822_p7 = pnand %p821_p4, %p967_p5 }
 0x1fd   : > { %p827_p11 = por %p826_p10, %p825_p9 }
 0x1fe   : > { %p823_p8 = pneg %p822_p7 }
 0x200   : > { %p828_p12 = pnand %p827_p11, %p823_p8 }
 0x202   : > { %831 = shalt.err (!%p828_p12)
}
 0x203   : > { %728 = dma.vmem_to_hbm [thread:$0]  (%p967_p5), %s1059_s28, 16, %s1057_s6, %s605_s10   ;;  %v601_v17 = vsel %vm570_vm2, %v600_v45, %v596_v47 }
 0x204   : > { %603 = vst.msk [vmem:[%s199_s29] sm:$0x1] %vm573_vm3, %v601_v17  ;;  %s609_s8 = scalar_lea.sflag [#allocation5], %s1040_s22  ;;  %s832_s11 = scalar_lea.vmem %s1071_s30, 16 }
 0x205   : > { %p833_p13 = scmp.ne.s32.totalorder %s1071_s30, %s832_s11  ;;  %s903_s12 = smov [#allocation4]  }
 0x206   : > { %s836_s13 = sshll.u32 %s903_s12, 4  ;;  %s837_s13 = int_to_ptr.vmem [resolvable:$false] %s836_s13 }
 0x207   : > { %p834_p0 = pnand %p833_p13, %p967_p5  ;;  %s838_s14 = scalar_lea.vmem %s837_s13, 32 }
 0x208   : > { %p839_p2 = scmp.lt.s32.totalorder %s1071_s30, %s837_s13  ;;  %p840_p3 = scmp.lt.s32.totalorder %s838_s14, %s832_s11 }
 0x209   : > { %p835_p1 = pneg %p834_p0 }
 0x20a   : > { %p841_p4 = por %p840_p3, %p839_p2 }
 0x20c   : > { %p842_p7 = pnand %p841_p4, %p835_p1 }
 0x20e   : > { %845 = shalt.err (!%p842_p7)
}
 0x20f   : > { %s846_s28 = scalar_lea.hbm %s1069_s9, 16  ;;  %s850_s6 = scalar_lea.hbm %s1140_s4, 32 }
 0x210   : > { %p847_p8 = scmp.ne.s32.totalorder %s1069_s9, %s846_s28  ;;  %p851_p11 = scmp.lt.s32.totalorder %s1069_s9, %s1140_s4 }
 0x211   : > { %p852_p12 = scmp.lt.s32.totalorder %s850_s6, %s846_s28 }
 0x212   : > { %p848_p9 = pnand %p847_p8, %p967_p5 }
 0x213   : > { %p853_p13 = por %p852_p12, %p851_p11 }
 0x214   : > { %p849_p10 = pneg %p848_p9 }
 0x216   : > { %p854_p0 = pnand %p853_p13, %p849_p10 }
 0x218   : > { %857 = shalt.err (!%p854_p0)
}
 0x219   : > { %729 = dma.vmem_to_hbm [thread:$0]  (%p967_p5), %s1071_s30, 16, %s1069_s9, %s609_s8  }
 0x21a PF: > { %p739_p1 = scmp.ge.s32.totalorder %s896_s18, 2  ;;  %s646_s23 = sand.u32 1, %s884_s15  }
 0x21b   : > { %s647_s27 = scalar_lea.sflag [#allocation3], %s646_s23 }
 0x21c   : > { %p733_p2 = pnand %p739_p1, %p971_p6 }
 0x21e   : > { %p734_p3 = pneg %p733_p2 }
 0x220   : > { %875 = dma.done.wait (%p734_p3), %s647_s27, 16  }
 0x221   : > { %877 = vsyncadd (%p734_p3), %s647_s27, 4294967280  ;;  %s655_s19 = scalar_lea.sflag [#allocation5], %s646_s23 }
 0x222   : > { %879 = dma.done.wait (%p734_p3), %s655_s19, 16  }
 0x223   : > { %881 = vsyncadd (%p734_p3), %s655_s19, 4294967280  ;;  %p18_p5 = scmp.ge.s32.totalorder %s954_s21, 4   ;;  %s1143_s15 = smov %s888_s16 }
 0x224   : > { %s1144_s16 = smov %s892_s17  ;;  %s1145_s17 = smov %s965_s24 }
 0x225   : > { %s1146_s18 = smov %s954_s21  ;;  %20 = sbr.rel (!%p18_p5) target bundleno = 5 (0x5), region = 84 }
 0x22a   :  { %659 = vsyncpa [#allocation3], 1 }
 0x22b   :  { %661 = vsyncpa [#allocation3 + $0x1], 1 }
 0x22c   :  { %662 = vsyncpa [#allocation5], 1 }
 0x22d   :  { %664 = vsyncpa [#allocation5 + $0x1], 1 }

</bundles_post_ra>
